<compile_context>
chip_gen: v7x
topology: tpu7x:2x2x1
jax: 0.10.0
libtpu: 0.0.40
codegen_flags: <defaults>
</compile_context>

<pallas_src>
import functools
import math

import jax
import jax.numpy as jnp
from jax.experimental import pallas as pl
from jax.experimental.pallas import tpu as pltpu


def _cdiv(a, b):
    return -(-a // b)


def _round_up(n, m):
    return _cdiv(n, m) * m


def _vmem_limit(request_bytes):
    """Scoped-VMEM limit: actual request + headroom, clamped to 75% of physical VMEM."""
    cap = 64 << 20  # conservative default = v7x physical VMEM per TensorCore
    try:
        cap = int(getattr(pltpu.get_tpu_info(), "vmem_capacity_bytes", cap) or cap)
    except Exception:
        pass
    return int(max(16 << 20, min((cap * 3) // 4, request_bytes + (8 << 20))))


# ---------------------------------------------------------------------------
# Kernel 1: QKV projection.  Grid = (sequence tiles, d_out tiles); weights are
# resident per d_out tile.  1/sqrt(d_out) is folded into Q here (O(S*d_out)
# multiplies instead of O(S^2) work on the score matrix).
# ---------------------------------------------------------------------------
def _qkv_proj_kernel(x_ref, wq_ref, wk_ref, wv_ref, q_ref, k_ref, v_ref, *, scale):
    x = x_ref[...]                                              # (tm, d_in_p)
    q = jnp.dot(x, wq_ref[...], preferred_element_type=jnp.float32)
    q_ref[...] = (q * scale).astype(q_ref.dtype)
    k_ref[...] = jnp.dot(x, wk_ref[...],
                         preferred_element_type=jnp.float32).astype(k_ref.dtype)
    v_ref[...] = jnp.dot(x, wv_ref[...],
                         preferred_element_type=jnp.float32).astype(v_ref.dtype)


# ---------------------------------------------------------------------------
# Kernel 2: flash attention, grid = (q tiles [parallel], kv tiles [arbitrary]).
# Online softmax with f32 accumulators in lane-dense VMEM scratch.
# TODO(synk): single-head D=128 only feeds half the 256-wide MXU on v6e/v7x;
# with multiple heads / a batch dim they should be folded into the lane dim.
# ---------------------------------------------------------------------------
def _flash_attn_kernel(q_ref, k_ref, v_ref, o_ref, m_sc, l_sc, acc_sc,
                       *, seq_len, tkv, kv_rep, d_rep, mask_kv):
    kv = pl.program_id(1)
    last_kv = pl.num_programs(1) - 1

    @pl.when(kv == 0)
    def _():
        m_sc[...] = jnp.full(m_sc.shape, -jnp.inf, m_sc.dtype)
        l_sc[...] = jnp.zeros_like(l_sc)
        acc_sc[...] = jnp.zeros_like(acc_sc)

    def step(apply_mask):
        # QK^T without an explicit transpose: contract both operands on the
        # feature dim (scale already folded into Q).
        s = jax.lax.dot_general(
            q_ref[...], k_ref[...],
            dimension_numbers=(((1,), (1,)), ((), ())),
            preferred_element_type=jnp.float32)                 # (tq, tkv) f32
        if apply_mask:  # only traced/ran on the kv tile straddling seq_len
            kv_pos = kv * tkv + jax.lax.broadcasted_iota(jnp.int32, s.shape, 1)
            s = jnp.where(kv_pos < seq_len, s, jnp.float32(-1e30))

        m_prev = m_sc[...]                                      # (tq, 128) lanes equal
        m_cur = jnp.max(s, axis=-1, keepdims=True)              # (tq, 1)
        m_new = jnp.maximum(m_prev, m_cur)                      # (tq, 128)
        alpha = jnp.exp(m_prev - m_new)                         # (tq, 128)
        m_rep = jnp.tile(m_new, (1, kv_rep)) if kv_rep > 1 else m_new
        sh = s - m_rep                                          # max-shifted, <= 0

        if v_ref.dtype == jnp.bfloat16:
            # bf16 EUP (v6e/v7x): ~2x exp throughput; input is max-shifted into
            # (-inf, 0] so bf16 range is safe, and p is already the MXU dtype.
            p = jnp.exp(sh.astype(jnp.bfloat16))
            p_sum = jnp.sum(p.astype(jnp.float32), axis=-1, keepdims=True)
        else:
            p = jnp.exp(sh)
            p_sum = jnp.sum(p, axis=-1, keepdims=True)
        pv = jnp.dot(p.astype(v_ref.dtype), v_ref[...],
                     preferred_element_type=jnp.float32)        # (tq, D)

        alpha_d = jnp.tile(alpha, (1, d_rep)) if d_rep > 1 else alpha
        l_sc[...] = alpha * l_sc[...] + p_sum
        acc_sc[...] = alpha_d * acc_sc[...] + pv
        m_sc[...] = m_new

    if mask_kv:
        @pl.when(kv != last_kv)
        def _():
            step(False)

        @pl.when(kv == last_kv)
        def _():
            step(True)
    else:
        step(False)

    @pl.when(kv == last_kv)
    def _():
        inv_l = 1.0 / l_sc[...]                                 # exact; once per q tile
        inv_d = jnp.tile(inv_l, (1, d_rep)) if d_rep > 1 else inv_l
        o_ref[...] = (acc_sc[...] * inv_d).astype(o_ref.dtype)


# ---------------------------------------------------------------------------
# Wrapper
# ---------------------------------------------------------------------------
def self_attention_v1(x, w_query, w_key, w_value, *,
                      q_tile=1024, kv_tile=1024, compute_dtype=None):
    """x: (seq_len, d_in); weights: (d_in, d_out). Returns (seq_len, d_out).

    compute_dtype: storage / MXU-input dtype for x, the weights, and the Q/K/V
    intermediates (softmax math and accumulation always stay f32).  Pass
    jnp.bfloat16 for 2x MXU throughput and half the HBM traffic; the default
    inherits x.dtype.
    """
    seq_len, d_in = x.shape
    d_out = w_query.shape[1]
    out_dtype = x.dtype
    dtype = jnp.dtype(compute_dtype) if compute_dtype is not None else jnp.dtype(x.dtype)
    csz = dtype.itemsize
    scale = 1.0 / math.sqrt(d_out)               # keys.shape[-1] in the reference

    # Lane-dense padded feature dims.
    d_in_p = _round_up(d_in, 128)
    d_out_p = _round_up(d_out, 128)
    d_rep = d_out_p // 128

    # ---- attention tile selection ------------------------------------------------
    # kv tiles are multiples of 128 (lane-dense m/l scratch is tiled across the kv
    # lanes); q tiles only need sublane (8) alignment.
    tkv = min(_round_up(kv_tile, 128), _round_up(seq_len, 128))
    tq = min(_round_up(q_tile, 8), _round_up(seq_len, 8))
    # v7x has 2 TensorCores and only the "parallel" q axis can be split across them:
    # ensure >= 2 q tiles whenever the sequence is large enough to matter.
    if seq_len >= 256 and _cdiv(seq_len, tq) < 2:
        tq = _round_up(_cdiv(seq_len, 2), 8)

    def _attn_bytes(tq_, tkv_):
        blocks = 2 * csz * (2 * tq_ * d_out_p + 2 * tkv_ * d_out_p)  # q,o,k,v (x2 buf)
        scratch = 4 * (tq_ * d_out_p + 2 * tq_ * 128)                # f32 acc, m, l
        temps = 3 * 4 * tq_ * tkv_                                   # f32 score/prob temps
        return blocks + scratch + temps

    # Keep the per-step working set well under v7x's 64 MiB physical VMEM.
    while _attn_bytes(tq, tkv) > (28 << 20):
        if tkv > 128 and tkv >= tq:
            tkv = max(128, ((tkv // 2) // 128) * 128)
        elif tq > 8:
            tq = max(8, _round_up(tq // 2, 8))
        else:
            break
    kv_rep = tkv // 128

    s_q = _round_up(seq_len, tq)       # rows covered by the q grid
    s_kv = _round_up(seq_len, tkv)     # rows covered by the kv grid
    mask_kv = (seq_len % tkv) != 0     # only the last kv tile straddles seq_len

    # ---- projection tile selection -------------------------------------------------
    # Tile weights over d_out when three resident (double-buffered) weight blocks
    # would crowd VMEM (matters for large d on v7x's 64 MiB VMEM).
    tn = d_out_p
    w_budget = 12 << 20
    if 2 * 3 * d_in_p * d_out_p * csz > w_budget:
        tn = 128
        for cand in range(d_out_p, 127, -128):
            if d_out_p % cand == 0 and 2 * 3 * d_in_p * cand * csz <= w_budget:
                tn = cand
                break
    # TODO(synk): for very large d_in the reduction dim should be tiled as well.
    tm = tq
    while tm > 8 and (2 * csz * (tm * d_in_p + 3 * tm * tn)
                      + 2 * 3 * d_in_p * tn * csz) > (28 << 20):
        tm = max(8, _round_up(tm // 2, 8))

    # One padded sequence length covering every grid; the projection writes all of
    # it, so padded K/V rows are exactly zero (never uninitialized memory).
    s_pad = _round_up(max(s_q, s_kv), tm)

    # ---- pad & cast inputs ----------------------------------------------------------
    x_p = jnp.zeros((s_pad, d_in_p), dtype).at[:seq_len, :d_in].set(x.astype(dtype))
    wq_p = jnp.zeros((d_in_p, d_out_p), dtype).at[:d_in, :d_out].set(w_query.astype(dtype))
    wk_p = jnp.zeros((d_in_p, d_out_p), dtype).at[:d_in, :d_out].set(w_key.astype(dtype))
    wv_p = jnp.zeros((d_in_p, d_out_p), dtype).at[:d_in, :d_out].set(w_value.astype(dtype))

    # ---- pass 1: Q (pre-scaled), K, V ----
    proj_bytes = 2 * csz * (tm * d_in_p + 3 * d_in_p * tn + 3 * tm * tn)
    q, k, v = pl.pallas_call(
        functools.partial(_qkv_proj_kernel, scale=scale),
        out_shape=(jax.ShapeDtypeStruct((s_pad, d_out_p), dtype),) * 3,
        grid_spec=pltpu.PrefetchScalarGridSpec(
            num_scalar_prefetch=0,
            grid=(s_pad // tm, d_out_p // tn),
            in_specs=[
                pl.BlockSpec((tm, d_in_p), lambda i, j: (i, 0)),
                pl.BlockSpec((d_in_p, tn), lambda i, j: (0, j)),
                pl.BlockSpec((d_in_p, tn), lambda i, j: (0, j)),
                pl.BlockSpec((d_in_p, tn), lambda i, j: (0, j)),
            ],
            out_specs=[
                pl.BlockSpec((tm, tn), lambda i, j: (i, j)),
                pl.BlockSpec((tm, tn), lambda i, j: (i, j)),
                pl.BlockSpec((tm, tn), lambda i, j: (i, j)),
            ],
        ),
        compiler_params=pltpu.CompilerParams(
            dimension_semantics=("parallel", "parallel"),
            vmem_limit_bytes=_vmem_limit(proj_bytes),
        ),
    )(x_p, wq_p, wk_p, wv_p)

    # ---- pass 2: flash attention ----
    out_p = pl.pallas_call(
        functools.partial(_flash_attn_kernel, seq_len=seq_len, tkv=tkv,
                          kv_rep=kv_rep, d_rep=d_rep, mask_kv=mask_kv),
        out_shape=jax.ShapeDtypeStruct((s_q, d_out_p), dtype),
        grid_spec=pltpu.PrefetchScalarGridSpec(
            num_scalar_prefetch=0,
            grid=(s_q // tq, s_kv // tkv),          # = (cdiv(S, tq), cdiv(S, tkv))
            in_specs=[
                pl.BlockSpec((tq, d_out_p), lambda i, j: (i, 0)),
                pl.BlockSpec((tkv, d_out_p), lambda i, j: (j, 0)),
                pl.BlockSpec((tkv, d_out_p), lambda i, j: (j, 0)),
            ],
            out_specs=pl.BlockSpec((tq, d_out_p), lambda i, j: (i, 0)),
            scratch_shapes=[
                pltpu.VMEM((tq, 128), jnp.float32),       # running max m (lane-dense)
                pltpu.VMEM((tq, 128), jnp.float32),       # running denom l (lane-dense)
                pltpu.VMEM((tq, d_out_p), jnp.float32),   # output accumulator
            ],
        ),
        compiler_params=pltpu.CompilerParams(
            dimension_semantics=("parallel", "arbitrary"),
            vmem_limit_bytes=_vmem_limit(_attn_bytes(tq, tkv)),
        ),
    )(q, k, v)

    return out_p[:seq_len, :d_out].astype(out_dtype)


def reference(x, wq, wk, wv):
    q = x @ wq
    k = x @ wk
    v = x @ wv
    attn = jax.nn.softmax((q @ k.T) / (k.shape[-1] ** 0.5), axis=-1)
    return attn @ v


if __name__ == "__main__":
    key = jax.random.PRNGKey(0)
    seq_len, d_in, d_out = 8, 32, 32

    kx, kq, kk, kvk = jax.random.split(key, 4)
    # Deterministic parameter init mirroring torch.rand (uniform [0, 1)).
    x = jax.random.uniform(kx, (seq_len, d_in), dtype=jnp.float32)
    w_query = jax.random.uniform(kq, (d_in, d_out), dtype=jnp.float32)
    w_key = jax.random.uniform(kk, (d_in, d_out), dtype=jnp.float32)
    w_value = jax.random.uniform(kvk, (d_in, d_out), dtype=jnp.float32)

    out = jax.block_until_ready(self_attention_v1(x, w_query, w_key, w_value))
    ref = jax.block_until_ready(reference(x, w_query, w_key, w_value))

    assert out.shape == (seq_len, d_out)
    max_err = float(jnp.max(jnp.abs(out - ref)))
    assert jnp.allclose(out, ref, atol=2e-3, rtol=2e-3), max_err

    print("KERNEL_OK")
</pallas_src>

<mosaic_0001>
module attributes {stable_mosaic.version = 11 : i64} {
  func.func @_qkv_proj_kernel(%arg0: i32, %arg1: i32, %arg2: memref<8x128xf32, #tpu.memory_space<vmem>>, %arg3: memref<128x128xf32, #tpu.memory_space<vmem>>, %arg4: memref<128x128xf32, #tpu.memory_space<vmem>>, %arg5: memref<128x128xf32, #tpu.memory_space<vmem>>, %arg6: memref<8x128xf32, #tpu.memory_space<vmem>>, %arg7: memref<8x128xf32, #tpu.memory_space<vmem>>, %arg8: memref<8x128xf32, #tpu.memory_space<vmem>>) attributes {dimension_semantics = [#tpu.dimension_semantics<parallel>, #tpu.dimension_semantics<parallel>], iteration_bounds = array<i64: 16, 1>, scalar_prefetch = 0 : i64, scratch_operands = 0 : i64, tpu.core_type = #tpu.core_type<tc>, window_params = [{transform_indices = @transform_0, window_bounds = array<i64: 8, 128>}, {transform_indices = @transform_1, window_bounds = array<i64: 128, 128>}, {transform_indices = @transform_2, window_bounds = array<i64: 128, 128>}, {transform_indices = @transform_3, window_bounds = array<i64: 128, 128>}, {transform_indices = @transform_4, window_bounds = array<i64: 8, 128>}, {transform_indices = @transform_5, window_bounds = array<i64: 8, 128>}, {transform_indices = @transform_6, window_bounds = array<i64: 8, 128>}]} {
    %c0 = arith.constant 0 : index
    %c0_0 = arith.constant 0 : index
    %0 = vector.load %arg2[%c0, %c0_0] : memref<8x128xf32, #tpu.memory_space<vmem>>, vector<8x128xf32>
    %c0_1 = arith.constant 0 : index
    %c0_2 = arith.constant 0 : index
    %1 = vector.load %arg3[%c0_1, %c0_2] : memref<128x128xf32, #tpu.memory_space<vmem>>, vector<128x128xf32>
    %cst = arith.constant dense<0.000000e+00> : vector<8x128xf32>
    %2 = tpu.matmul %0, %1, %cst {dimension_numbers = #tpu.dot_dimension_numbers<[1], [0], [0], [1], [0, 0, 1, 1], [], []>} : vector<8x128xf32>, vector<128x128xf32>, vector<8x128xf32> -> vector<8x128xf32>
    %cst_3 = arith.constant 0.176776692 : f32
    %3 = vector.broadcast %cst_3 : f32 to vector<8x128xf32>
    %4 = arith.mulf %2, %3 : vector<8x128xf32>
    %c0_4 = arith.constant 0 : index
    %c0_5 = arith.constant 0 : index
    %5 = vector.load %arg6[%c0_4, %c0_5] : memref<8x128xf32, #tpu.memory_space<vmem>>, vector<8x128xf32>
    tpu.vector_store %arg6[%c0_4, %c0_5], %4 {strides = array<i32>} : memref<8x128xf32, #tpu.memory_space<vmem>>, vector<8x128xf32>,
    %c0_6 = arith.constant 0 : index
    %c0_7 = arith.constant 0 : index
    %6 = vector.load %arg4[%c0_6, %c0_7] : memref<128x128xf32, #tpu.memory_space<vmem>>, vector<128x128xf32>
    %cst_8 = arith.constant dense<0.000000e+00> : vector<8x128xf32>
    %7 = tpu.matmul %0, %6, %cst_8 {dimension_numbers = #tpu.dot_dimension_numbers<[1], [0], [0], [1], [0, 0, 1, 1], [], []>} : vector<8x128xf32>, vector<128x128xf32>, vector<8x128xf32> -> vector<8x128xf32>
    %c0_9 = arith.constant 0 : index
    %c0_10 = arith.constant 0 : index
    %8 = vector.load %arg7[%c0_9, %c0_10] : memref<8x128xf32, #tpu.memory_space<vmem>>, vector<8x128xf32>
    tpu.vector_store %arg7[%c0_9, %c0_10], %7 {strides = array<i32>} : memref<8x128xf32, #tpu.memory_space<vmem>>, vector<8x128xf32>,
    %c0_11 = arith.constant 0 : index
    %c0_12 = arith.constant 0 : index
    %9 = vector.load %arg5[%c0_11, %c0_12] : memref<128x128xf32, #tpu.memory_space<vmem>>, vector<128x128xf32>
    %cst_13 = arith.constant dense<0.000000e+00> : vector<8x128xf32>
    %10 = tpu.matmul %0, %9, %cst_13 {dimension_numbers = #tpu.dot_dimension_numbers<[1], [0], [0], [1], [0, 0, 1, 1], [], []>} : vector<8x128xf32>, vector<128x128xf32>, vector<8x128xf32> -> vector<8x128xf32>
    %c0_14 = arith.constant 0 : index
    %c0_15 = arith.constant 0 : index
    %11 = vector.load %arg8[%c0_14, %c0_15] : memref<8x128xf32, #tpu.memory_space<vmem>>, vector<8x128xf32>
    tpu.vector_store %arg8[%c0_14, %c0_15], %10 {strides = array<i32>} : memref<8x128xf32, #tpu.memory_space<vmem>>, vector<8x128xf32>,
    return
  }
  func.func @transform_0(%arg0: i32, %arg1: i32) -> (i32, i32) {
    %c0_i32 = arith.constant 0 : i32
    %c0_i32_0 = arith.constant 0 : i32
    return %arg0, %c0_i32 : i32, i32
  }
  func.func @transform_1(%arg0: i32, %arg1: i32) -> (i32, i32) {
    %c0_i32 = arith.constant 0 : i32
    %c0_i32_0 = arith.constant 0 : i32
    return %c0_i32, %arg1 : i32, i32
  }
  func.func @transform_2(%arg0: i32, %arg1: i32) -> (i32, i32) {
    %c0_i32 = arith.constant 0 : i32
    %c0_i32_0 = arith.constant 0 : i32
    return %c0_i32, %arg1 : i32, i32
  }
  func.func @transform_3(%arg0: i32, %arg1: i32) -> (i32, i32) {
    %c0_i32 = arith.constant 0 : i32
    %c0_i32_0 = arith.constant 0 : i32
    return %c0_i32, %arg1 : i32, i32
  }
  func.func @transform_4(%arg0: i32, %arg1: i32) -> (i32, i32) {
    %c0_i32 = arith.constant 0 : i32
    return %arg0, %arg1 : i32, i32
  }
  func.func @transform_5(%arg0: i32, %arg1: i32) -> (i32, i32) {
    %c0_i32 = arith.constant 0 : i32
    return %arg0, %arg1 : i32, i32
  }
  func.func @transform_6(%arg0: i32, %arg1: i32) -> (i32, i32) {
    %c0_i32 = arith.constant 0 : i32
    return %arg0, %arg1 : i32, i32
  }
}

</mosaic_0001>

<bundles_post_ra>
// kernel: tpu_custom_call.1
= control target key start
LH: loop header
LB: loop body
LE: loop exit
PB: predicated region body
PF: predicated region fallthrough
CT: control target
= control target key end

     0   :  { %12 = vsyncpa [#allocation3], 0  ;;  %s1927_s0 = inlined_call_operand.hbm [shape: f32[128,128], index: 0, kind: input, shape index: {}]   ;;  %s1928_s1 = inlined_call_operand.hbm [shape: f32[128,128], index: 1, kind: input, shape index: {}]   ;;  %s1929_s2 = inlined_call_operand.hbm [shape: f32[128,128], index: 2, kind: input, shape index: {}]   ;;  %s1930_s3 = inlined_call_operand.hbm [shape: f32[128,128], index: 3, kind: input, shape index: {}]   ;;  %s1931_s4 = inlined_call_operand.hbm [shape: f32[128,128], index: 4, kind: output, shape index: {0}]   ;;  %s1932_s5 = inlined_call_operand.hbm [shape: f32[128,128], index: 5, kind: output, shape index: {1}]   ;;  %s1933_s6 = inlined_call_operand.hbm [shape: f32[128,128], index: 6, kind: output, shape index: {2}]  }
   0x1   :  { %14 = vsyncpa [#allocation3 + $0x1], 0 }
   0x2   :  { %15 = vsyncpa [#allocation6], 0 }
   0x3   :  { %16 = vsyncpa [#allocation9], 0 }
   0x4   :  { %17 = vsyncpa [#allocation4], 0 }
   0x5   :  { %19 = vsyncpa [#allocation4 + $0x1], 0 }
   0x6   :  { %20 = vsyncpa [#allocation12], 0 }
   0x7   :  { %22 = vsyncpa [#allocation12 + $0x1], 0  ;;  %s1535_s21 = smov 0   ;;  %s1537_s22 = smov 0  }
   0x8   :  { %s1539_s23 = smov 0   ;;  %s1541_s24 = smov 0  }
   0x9   :  { %s1543_s25 = smov 0   ;;  %s1545_s26 = smov 0  }
   0xa LB: > { %1940 = sst [smem:[#allocation19_spill]] %s1466_s21  ;;  %s1566_s27 = sadd.s32 4294967295, %s1486_s26   ;;  %s1486_s26 = sphi %s1545_s26, %s28_s26   ;;  %s1482_s25 = sphi %s1543_s25, %s1965_s25   ;;  %s1478_s24 = sphi %s1541_s24, %s1964_s24   ;;  %s1474_s23 = sphi %s1539_s23, %s1963_s23   ;;  %s1470_s22 = sphi %s1537_s22, %s1962_s22   ;;  %s1466_s21 = sphi %s1535_s21, %s1961_s21  }
   0xb   : > { %s1935_s28 = sadd.s32 4294967294, %s1486_s26   ;;  %p60_p0 = scmp.ne.s32.totalorder %s1470_s22, %s1466_s21 }
   0xc   : > { %p1934_p1 = scmp.eq.s32.totalorder %s1566_s27, 0  ;;  %p170_p3 = scmp.eq.s32.totalorder %s1935_s28, 15 }
   0xd   : > { %p863_p5 = scmp.ge.s32.totalorder %s1486_s26, 1  ;;  %p233_p7 = scmp.lt.s32.totalorder %s1486_s26, 17 }
   0xe   : > { %p1577_p4 = por %p1934_p1, %p60_p0  ;;  %p1582_p6 = por %p170_p3, %p60_p0 }
   0xf   : > { %p1587_p8 = pnand %p863_p5, %p233_p7  ;;  %s1488_s8 = smov [#allocation5]  }
  0x10   : > { %s1941_s29 = scalar_select %p1577_p4, 1, 0 }
  0x11   : > { %s1942_s30 = scalar_select %p1582_p6, 1, 0 }
  0x12   : > { %s1944_s7 = scalar_select %p1587_p8, 1, 0 }
  0x13   : > { %1943 = sst [smem:[#allocation20_spill]] %s1942_s30  ;;  %s247_s9 = sshll.u32 %s1488_s8, 4  ;;  %s1591_s9 = int_to_ptr.vmem [resolvable:$true] %s247_s9 }
  0x14   : > { %p1134_p9 = pneg %p1587_p8  ;;  %s1489_s11 = smov [#allocation7]  }
  0x15   : > { %s262_s12 = sshll.u32 %s1489_s11, 4  ;;  %s1490_s13 = smov [#allocation8]   ;;  %s1601_s12 = int_to_ptr.vmem [resolvable:$true] %s262_s12 }
  0x16   : > { %p1597_p10 = pnand %p1134_p9, %p1934_p1  ;;  %s1603_s14 = sshll.u32 %s1490_s13, 4  ;;  %s278_s14 = int_to_ptr.vmem [resolvable:$true] %s1603_s14 }
  0x17   : > { %s1222_s17 = scalar_lea.hbm %s1928_s1, 2048 }
  0x18   : > { %p1223_p11 = scmp.ne.s32.totalorder %s1928_s1, %s1222_s17  ;;  %p1613_p12 = pneg %p1597_p10 }
  0x19   : > { %p1229_p3 = scmp.lt.u32.totalorder %s1222_s17, %s1928_s1 }
  0x1a   : > { %p1225_p13 = pnand %p1613_p12, %p1223_p11 }
  0x1c   : > { %p1226_p0 = pneg %p1225_p13 }
  0x1e   : > { %p1231_p5 = pnand %p1229_p3, %p1226_p0 }
  0x20   : > { %1234 = shalt.err (!%p1231_p5)
}
  0x21   : > { %s1235_s13 = scalar_lea.vmem %s1591_s9, 2048  ;;  %p1243_p2 = scmp.lt.s32.totalorder %s1591_s9, %s1591_s9 }
  0x22   : > { %p1236_p7 = scmp.ne.s32.totalorder %s1591_s9, %s1235_s13  ;;  %p1244_p6 = scmp.lt.s32.totalorder %s1235_s13, %s1235_s13 }
  0x24   : > { %p1238_p9 = pnand %p1236_p7, %p1613_p12  ;;  %p1245_p11 = por %p1244_p6, %p1243_p2 }
  0x26   : > { %p1239_p1 = pneg %p1238_p9 }
  0x28   : > { %p1246_p13 = pnand %p1245_p11, %p1239_p1 }
  0x2a   : > { %1249 = shalt.err (!%p1246_p13)
}
  0x2b   : > { %s1491_s15 = smov 128   ;;  %s1492_s16 = smov 8  }
  0x2c   : > { %1137 = dma.hbm_to_vmem [thread:$0]  (!%p1597_p10), %s1928_s1, 2048, %s1591_s9, [#allocation6], %s1491_s15, %s1491_s15, %s1492_s16  }
  0x2d   : > { %s1250_s11 = scalar_lea.hbm %s1929_s2, 2048 }
  0x2e   : > { %p1251_p1 = scmp.ne.s32.totalorder %s1929_s2, %s1250_s11  ;;  %p1257_p0 = scmp.lt.u32.totalorder %s1250_s11, %s1929_s2 }
  0x30   : > { %p1253_p2 = pnand %p1251_p1, %p1613_p12 }
  0x32   : > { %p1254_p6 = pneg %p1253_p2 }
  0x34   : > { %p1259_p3 = pnand %p1257_p0, %p1254_p6 }
  0x36   : > { %1262 = shalt.err (!%p1259_p3)
}
  0x37   : > { %s1263_s9 = scalar_lea.vmem %s1601_s12, 2048  ;;  %p1271_p11 = scmp.lt.s32.totalorder %s1601_s12, %s1601_s12 }
  0x38   : > { %p1264_p5 = scmp.ne.s32.totalorder %s1601_s12, %s1263_s9  ;;  %p1272_p13 = scmp.lt.s32.totalorder %s1263_s9, %s1263_s9 }
  0x3a   : > { %p1266_p7 = pnand %p1264_p5, %p1613_p12  ;;  %p1273_p1 = por %p1272_p13, %p1271_p11 }
  0x3c   : > { %p1267_p9 = pneg %p1266_p7 }
  0x3e   : > { %p1274_p2 = pnand %p1273_p1, %p1267_p9 }
  0x40   : > { %1277 = shalt.err (!%p1274_p2)
}
  0x41   : > { %1140 = dma.hbm_to_vmem [thread:$0]  (!%p1597_p10), %s1929_s2, 2048, %s1601_s12, [#allocation6], %s1491_s15, %s1491_s15, %s1492_s16  }
  0x42   : > { %s1278_s18 = scalar_lea.hbm %s1930_s3, 2048 }
  0x43   : > { %p1279_p6 = scmp.ne.s32.totalorder %s1930_s3, %s1278_s18  ;;  %p1285_p5 = scmp.lt.u32.totalorder %s1278_s18, %s1930_s3 }
  0x45   : > { %p1281_p0 = pnand %p1279_p6, %p1613_p12 }
  0x47   : > { %p1282_p3 = pneg %p1281_p0 }
  0x49   : > { %p1287_p7 = pnand %p1285_p5, %p1282_p3 }
  0x4b   : > { %1290 = shalt.err (!%p1287_p7)
}
  0x4c   : > { %s1291_s9 = scalar_lea.vmem %s278_s14, 2048  ;;  %p1299_p1 = scmp.lt.s32.totalorder %s278_s14, %s278_s14 }
  0x4d   : > { %p1292_p9 = scmp.ne.s32.totalorder %s278_s14, %s1291_s9  ;;  %p1300_p2 = scmp.lt.s32.totalorder %s1291_s9, %s1291_s9 }
  0x4f   : > { %p1294_p11 = pnand %p1292_p9, %p1613_p12  ;;  %p1301_p4 = por %p1300_p2, %p1299_p1 }
  0x51   : > { %p1295_p13 = pneg %p1294_p11 }
  0x53   : > { %p1302_p8 = pnand %p1301_p4, %p1295_p13 }
  0x55   : > { %1305 = shalt.err (!%p1302_p8)
}
  0x56   : > { %1143 = dma.hbm_to_vmem [thread:$0]  (!%p1597_p10), %s1930_s3, 2048, %s278_s14, [#allocation9], %s1491_s15, %s1491_s15, %s1492_s16  }
  0x57   : > { %s47_s20 = sadd.s32 1, %s1474_s23  ;;  %s40_s10 = sadd.s32 1, %s1482_s25 }
  0x58   : > { %p54_p4 = scmp.ne.s32.totalorder %s1474_s23, %s1470_s22  ;;  %p42_p8 = scmp.ge.s32.totalorder %s40_s10, 16 }
  0x59   : > { %p55_p12 = scmp.eq.s32.totalorder %s1486_s26, 0  ;;  %p1947_p6 = scmp.eq.s32.totalorder %s1566_s27, 15 }
  0x5a   : > { %p1161_p3 = scmp.lt.s32.totalorder %s1486_s26, 16  ;;  %s1967_s10 = smov (%p42_p8, %s40_s10), 0 }
  0x5b   : > { %p1692_p0 = por %p1947_p6, %p54_p4  ;;  %p56_p5 = por %p55_p12, %p54_p4 }
  0x5c   : > { %s291_s30 = sand.u32 1, %s1474_s23   ;;  %s44_s17 = ssub.s32 %s1482_s25, %s1967_s10 }
  0x5d   : > { %p45_p7 = scmp.eq.s32.totalorder %s44_s17, 0  ;;  %s868_s14 = sshll.u32 %s291_s30, 3 }
  0x5e   : > { %s869_s15 = sshll.u32 %s1482_s25, 7  ;;  %s295_s11 = scalar_lea.vmem [#allocation2], %s868_s14 }
  0x5f   : > { %s1704_s16 = scalar_select %p45_p7, %s1474_s23, %s47_s20  }
  0x60   : > { %s1709_s8 = scalar_lea.hbm %s1927_s0, %s869_s15  ;;  %s302_s13 = sshll.u32 %s295_s11, 4  ;;  %s1711_s13 = int_to_ptr.vmem [resolvable:$true] %s302_s13 }
  0x61   : > { %p1715_p10 = pnand %p1161_p3, %p56_p5  ;;  %s292_s12 = scalar_lea.sflag [#allocation3], %s291_s30 }
  0x62   : > { %s1306_s21 = scalar_lea.hbm %s1709_s8, 128  ;;  %s1311_s14 = scalar_lea.hbm %s1927_s0, 2048 }
  0x63   : > { %p1307_p9 = scmp.ne.s32.totalorder %s1709_s8, %s1306_s21  ;;  %p1308_p11 = pneg %p1715_p10 }
  0x64   : > { %p1312_p2 = scmp.lt.u32.totalorder %s1709_s8, %s1927_s0  ;;  %p1313_p4 = scmp.lt.u32.totalorder %s1311_s14, %s1306_s21 }
  0x65   : > { %p1309_p13 = pnand %p1308_p11, %p1307_p9  ;;  %p1315_p12 = scmp.lt.u32.totalorder %s1306_s21, %s1709_s8 }
  0x66   : > { %p1314_p8 = por %p1313_p4, %p1312_p2 }
  0x67   : > { %p1310_p1 = pneg %p1309_p13 }
  0x68   : > { %p1316_p6 = por %p1315_p12, %p1314_p8 }
  0x6a   : > { %p1317_p3 = pnand %p1316_p6, %p1310_p1 }
  0x6c   : > { %1320 = shalt.err (!%p1317_p3)
}
  0x6d   : > { %s1321_s30 = scalar_lea.vmem %s1711_s13, 128  ;;  %s1493_s19 = smov [#allocation2]  }
  0x6e   : > { %p1322_p5 = scmp.ne.s32.totalorder %s1711_s13, %s1321_s30  ;;  %s1326_s11 = sshll.u32 %s1493_s19, 4  ;;  %s1327_s11 = int_to_ptr.vmem [resolvable:$false] %s1326_s11 }
  0x6f   : > { %s1328_s20 = scalar_lea.vmem %s1327_s11, 256  ;;  %p1329_p13 = scmp.lt.s32.totalorder %s1711_s13, %s1327_s11 }
  0x70   : > { %p1324_p7 = pnand %p1322_p5, %p1308_p11  ;;  %p1330_p2 = scmp.lt.s32.totalorder %s1328_s20, %s1321_s30 }
  0x72   : > { %p1325_p9 = pneg %p1324_p7  ;;  %p1331_p4 = por %p1330_p2, %p1329_p13 }
  0x74   : > { %p1332_p8 = pnand %p1331_p4, %p1325_p9 }
  0x76   : > { %1335 = shalt.err (!%p1332_p8)
}
  0x77   : > { %1147 = dma.hbm_to_vmem [thread:$0]  (!%p1715_p10), %s1709_s8, 128, %s1711_s13, %s292_s12  }
  0x78   : > { %p1950_p1 = scmp.ne.s32.totalorder %s1944_s7, 0 }
  0x79   : > { %s1747_s21 = sand.u32 (!%p1950_p1), 1, %s1470_s22   ;;  %p1951_p11 = scmp.ne.s32.totalorder (!%p1950_p1), %s1941_s29, 0 }
  0x7a   : > { %311 = sbr.rel (%p1950_p1) target bundleno = 446 (0x1be), region = 36  ;;  %s1750_s17 = sshll.u32 (!%p1950_p1), %s1747_s21, 3 }
  0x7b   : > { %s314_s14 = scalar_lea.sflag (!%p1950_p1), [#allocation3], %s1747_s21  ;;  %s317_s15 = scalar_lea.vmem (!%p1950_p1), [#allocation2], %s1750_s17 }
  0x81   : > { %1445 = dma.done.wait (%p1951_p11), %s314_s14, 128  }
  0x82   : > { %1447 = vsyncadd (%p1951_p11), %s314_s14, 4294967168  ;;  %p1952_p10 = scmp.eq.s32.totalorder %s1566_s27, 0 }
  0x84   : > { %1449 = dma.done.wait (%p1952_p10), [#allocation6], 4096   ;;  %p1953_p12 = pmov %p1952_p10 }
  0x85   : > { %p1954_p6 = pmov %p1952_p10 }
  0x86   : > { %1451 = vsyncadd (%p1953_p12), [#allocation6], 4294963200 }
  0x87   : > { %1453 = dma.done.wait (%p1954_p6), [#allocation9], 2048   ;;  %p1955_p3 = pmov %p1954_p6 }
  0x88   : > { %v1494_v0 = vmov 0.0|0.0   ;;  %vm1495_vm0 = vmmov 0   ;;  %v1496_v1 = vmov 0.0   ;;  %v369_v2 = vld [vmem:[#allocation5] sm:$0xff]  ;;  %v370_v3 = vld [vmem:[#allocation5 + $0x8] sm:$0xff]  ;;  %v371_v4 = vld [vmem:[#allocation5 + $0x10] sm:$0xff] }
  0x89   : > { %1455 = vsyncadd (%p1955_p3), [#allocation9], 4294965248  ;;  %1042 = vmatprep.subr.bf16.mxu0 %v1494_v0  ;;  %1066 = vmatprep.subr.bf16.mxu1 %v1494_v0  ;;  %v1043_v5 = vpack.c.bf16 %v370_v3, %v369_v2  ;;  %v372_v6 = vld [vmem:[#allocation5 + $0x18] sm:$0xff]  ;;  %v373_v8 = vld [vmem:[#allocation5 + $0x20] sm:$0xff]  ;;  %s1799_s29 = sshll.u32 %s1478_s24, 7  ;;  %s353_s7 = scalar_lea.vmem [#allocation10], %s1750_s17 }
  0x8a   : > { %969 = vmatprep.mubr.msk.f32.mxu0 %vm1495_vm0, %v1496_v1  ;;  %1004 = vmatprep.mubr.msk.f32.mxu1 %vm1495_vm0, %v1496_v1  ;;  %v1046_v7 = vpack.c.bf16 %v372_v6, %v371_v4  ;;  %v374_v9 = vld [vmem:[#allocation5 + $0x28] sm:$0xff]  ;;  %v457_v10 = vld [vmem:[#allocation7] sm:$0xff]  ;;  %v459_v14 = vld [vmem:[#allocation7 + $0x10] sm:$0xff]  ;;  %s656_s8 = sshll.u32 %s353_s7, 4  ;;  %s360_s13 = scalar_lea.vmem [#allocation11], %s1750_s17  ;;  %s1812_s8 = int_to_ptr.vmem [resolvable:$true] %s656_s8 }
  0x8b   : > { %1044 = vmatpush3.bf16.msra.mxu0 %v1043_v5  ;;  %v458_v11 = vld [vmem:[#allocation7 + $0x8] sm:$0xff]  ;;  %v1049_v13 = vpack.c.bf16 %v374_v9, %v373_v8  ;;  %v460_v15 = vld [vmem:[#allocation7 + $0x18] sm:$0xff]  ;;  %v375_v16 = vld [vmem:[#allocation5 + $0x30] sm:$0xff]  ;;  %s670_s9 = sshll.u32 %s360_s13, 4  ;;  %s1810_s19 = scalar_lea.hbm %s1931_s4, %s1799_s29  ;;  %s1814_s9 = int_to_ptr.vmem [resolvable:$true] %s670_s9 }
  0x8c   : > { %1045 = vmatprep.subr.bf16.mxu0 %v1494_v0  ;;  %v1067_v12 = vpack.c.bf16 %v458_v11, %v457_v10  ;;  %v376_v17 = vld [vmem:[#allocation5 + $0x38] sm:$0xff]  ;;  %v1070_v18 = vpack.c.bf16 %v460_v15, %v459_v14  ;;  %v461_v19 = vld [vmem:[#allocation7 + $0x20] sm:$0xff]  ;;  %v462_v20 = vld [vmem:[#allocation7 + $0x28] sm:$0xff]  ;;  %s1820_s20 = scalar_lea.hbm %s1932_s5, %s1799_s29  ;;  %s632_s14 = scalar_lea.sflag [#allocation4], %s1747_s21 }
  0x8d   : > { %v1052_v21 = vpack.c.bf16 %v376_v17, %v375_v16  ;;  %v377_v22 = vld [vmem:[#allocation5 + $0x40] sm:$0xff]  ;;  %v378_v23 = vld [vmem:[#allocation5 + $0x48] sm:$0xff]  ;;  %v1073_v24 = vpack.c.bf16 %v462_v20, %v461_v19  ;;  %v463_v25 = vld [vmem:[#allocation7 + $0x30] sm:$0xff]  ;;  %s1497_s18 = smov [#allocation10]  }
  0x8e   : > { %1068 = vmatpush3.bf16.msra.mxu1 %v1067_v12  ;;  %v464_v26 = vld [vmem:[#allocation7 + $0x38] sm:$0xff]  ;;  %v1055_v27 = vpack.c.bf16 %v378_v23, %v377_v22  ;;  %v379_v28 = vld [vmem:[#allocation5 + $0x50] sm:$0xff]  ;;  %v465_v31 = vld [vmem:[#allocation7 + $0x40] sm:$0xff]  ;;  %s1340_s30 = sshll.u32 %s1497_s18, 4  ;;  %s1341_s30 = int_to_ptr.vmem [resolvable:$false] %s1340_s30 }
  0x8f   : > { %1047 = vmatpush3.bf16.msra.mxu0 %v1046_v7  ;;  %1069 = vmatprep.subr.bf16.mxu1 %v1494_v0  ;;  %v380_v29 = vld [vmem:[#allocation5 + $0x58] sm:$0xff]  ;;  %v1076_v30 = vpack.c.bf16 %v464_v26, %v463_v25  ;;  %v466_v32 = vld [vmem:[#allocation7 + $0x48] sm:$0xff]  ;;  %v381_v34 = vld [vmem:[#allocation5 + $0x60] sm:$0xff]  ;;  %s1342_s12 = scalar_lea.vmem %s1341_s30, 256  ;;  %p1343_p13 = scmp.lt.s32.totalorder %s1812_s8, %s1341_s30 }
  0x90   : > { %1048 = vmatprep.subr.bf16.mxu0 %v1494_v0  ;;  %v1058_v33 = vpack.c.bf16 %v380_v29, %v379_v28  ;;  %v382_v35 = vld [vmem:[#allocation5 + $0x68] sm:$0xff]  ;;  %v1079_v36 = vpack.c.bf16 %v466_v32, %v465_v31  ;;  %v467_v37 = vld [vmem:[#allocation7 + $0x50] sm:$0xff]  ;;  %v468_v38 = vld [vmem:[#allocation7 + $0x58] sm:$0xff] }
  0x91   : > { %v1061_v39 = vpack.c.bf16 %v382_v35, %v381_v34  ;;  %v383_v40 = vld [vmem:[#allocation5 + $0x70] sm:$0xff]  ;;  %v384_v41 = vld [vmem:[#allocation5 + $0x78] sm:$0xff]  ;;  %v1082_v42 = vpack.c.bf16 %v468_v38, %v467_v37  ;;  %v469_v43 = vld [vmem:[#allocation7 + $0x60] sm:$0xff] }
  0x92   : > { %1071 = vmatpush3.bf16.msra.mxu1 %v1070_v18  ;;  %v470_v44 = vld [vmem:[#allocation7 + $0x68] sm:$0xff]  ;;  %v1064_v45 = vpack.c.bf16 %v384_v41, %v383_v40  ;;  %v544_v46 = vld [vmem:[#allocation8] sm:$0xff]  ;;  %v471_v49 = vld [vmem:[#allocation7 + $0x70] sm:$0xff] }
  0x93   : > { %1050 = vmatpush3.bf16.msra.mxu0 %v1049_v13  ;;  %1072 = vmatprep.subr.bf16.mxu1 %v1494_v0  ;;  %v545_v47 = vld [vmem:[#allocation8 + $0x8] sm:$0xff]  ;;  %v1085_v48 = vpack.c.bf16 %v470_v44, %v469_v43  ;;  %v472_v50 = vld [vmem:[#allocation7 + $0x78] sm:$0xff]  ;;  %v546_v53 = vld [vmem:[#allocation8 + $0x10] sm:$0xff] }
  0x94   : > { %1051 = vmatprep.subr.bf16.mxu0 %v1494_v0  ;;  %v368_v51 = vld [vmem:[%s317_s15] sm:$0xff]  ;;  %v1091_v52 = vpack.c.bf16 %v545_v47, %v544_v46  ;;  %v1088_v55 = vpack.c.bf16 %v472_v50, %v471_v49  ;;  %v548_v57 = vld [vmem:[#allocation8 + $0x20] sm:$0xff]  ;;  %v549_v58 = vld [vmem:[#allocation8 + $0x28] sm:$0xff]  ;;  %s1336_s15 = scalar_lea.vmem %s1812_s8, 128 }
  0x95   : > { %v547_v54 = vld [vmem:[#allocation8 + $0x18] sm:$0xff]  ;;  %v1097_v59 = vpack.c.bf16 %v549_v58, %v548_v57  ;;  %v550_v60 = vld [vmem:[#allocation8 + $0x30] sm:$0xff]  ;;  %v552_v63 = vld [vmem:[#allocation8 + $0x40] sm:$0xff]  ;;  %p1337_p5 = scmp.ne.s32.totalorder %s1812_s8, %s1336_s15  ;;  %p1344_p2 = scmp.lt.s32.totalorder %s1342_s12, %s1336_s15 }
  0x96   : > { %1074 = vmatpush3.bf16.msra.mxu1 %v1073_v24  ;;  %v1094_v56 = vpack.c.bf16 %v547_v54, %v546_v53  ;;  %v551_v61 = vld [vmem:[#allocation8 + $0x38] sm:$0xff]  ;;  %v553_v2 = vld [vmem:[#allocation8 + $0x48] sm:$0xff]  ;;  %v554_v3 = vld [vmem:[#allocation8 + $0x50] sm:$0xff] }
  0x97   : > { %1053 = vmatpush3.bf16.msra.mxu0 %v1052_v21  ;;  %1075 = vmatprep.subr.bf16.mxu1 %v1494_v0  ;;  %v1100_v62 = vpack.c.bf16 %v551_v61, %v550_v60  ;;  %v555_v4 = vld [vmem:[#allocation8 + $0x58] sm:$0xff]  ;;  %v556_v6 = vld [vmem:[#allocation8 + $0x60] sm:$0xff]  ;;  %v557_v7 = vld [vmem:[#allocation8 + $0x68] sm:$0xff]  ;;  %p1338_p7 = pnand %p1337_p5, %p1692_p0  ;;  %p1345_p4 = por %p1344_p2, %p1343_p13 }
  0x98   : > { %1054 = vmatprep.subr.bf16.mxu0 %v1494_v0  ;;  %v1106_v5 = vpack.c.bf16 %v555_v4, %v554_v3  ;;  %v1109_v8 = vpack.c.bf16 %v557_v7, %v556_v6  ;;  %v558_v9 = vld [vmem:[#allocation8 + $0x70] sm:$0xff]  ;;  %v559_v10 = vld [vmem:[#allocation8 + $0x78] sm:$0xff] }
  0x99   : > { %v1112_v11 = vpack.c.bf16 %v559_v10, %v558_v9  ;;  %p1339_p9 = pneg %p1338_p7 }
  0x9a   : > { %1077 = vmatpush3.bf16.msra.mxu1 %v1076_v30 }
  0x9b   : > { %1056 = vmatpush3.bf16.msra.mxu0 %v1055_v27  ;;  %1078 = vmatprep.subr.bf16.mxu1 %v1494_v0  ;;  %p1346_p8 = pnand %p1345_p4, %p1339_p9 }
  0x9c   : > { %1057 = vmatprep.subr.bf16.mxu0 %v1494_v0 }
  0x9e   : > { %1080 = vmatpush3.bf16.msra.mxu1 %v1079_v36 }
  0x9f   : > { %1059 = vmatpush3.bf16.msra.mxu0 %v1058_v33  ;;  %1081 = vmatprep.subr.bf16.mxu1 %v1494_v0 }
  0xa0   : > { %1060 = vmatprep.subr.bf16.mxu0 %v1494_v0 }
  0xa2   : > { %1083 = vmatpush3.bf16.msra.mxu1 %v1082_v42 }
  0xa3   : > { %1062 = vmatpush3.bf16.msra.mxu0 %v1061_v39  ;;  %1084 = vmatprep.subr.bf16.mxu1 %v1494_v0 }
  0xa4   : > { %1063 = vmatprep.subr.bf16.mxu0 %v1494_v0 }
  0xa6   : > { %1086 = vmatpush3.bf16.msra.mxu1 %v1085_v48 }
  0xa7   : > { %1065 = vmatpush3.bf16.msra.mxu0 %v1064_v45  ;;  %1087 = vmatprep.subr.bf16.mxu1 %v1494_v0 }
  0xa8   : > { %1090 = vmatprep.subr.bf16.mxu0 %v1494_v0 }
  0xaa   : > { %970 = vmatmul.mubr.f32.vlgmr.msra.gmra.mrb[0].mxu0 %v368_v51  ;;  %1089 = vmatpush3.bf16.msra.mxu1 %v1088_v55 }
  0xab   : > { %1092 = vmatpush3.bf16.msra.mxu0 %v1091_v52  ;;  %1039 = vmatprep.mubr.msk.f32.mxu0 %vm1495_vm0, %v1496_v1  ;;  %v1103_v1 = vpack.c.bf16 %v553_v2, %v552_v63 }
  0xac   : > { %1093 = vmatprep.subr.bf16.mxu0 %v1494_v0 }
  0xad   : > { %1005 = vmatmul.mubr.f32.vlgmr.msra.gmra.mrb[0].mxu1 %v368_v51 }
  0xaf   : > { %1095 = vmatpush3.bf16.msra.mxu0 %v1094_v56 }
  0xb0   : > { %1096 = vmatprep.subr.bf16.mxu0 %v1494_v0 }
  0xb3   : > { %1098 = vmatpush3.bf16.msra.mxu0 %v1097_v59 }
  0xb4   : > { %1099 = vmatprep.subr.bf16.mxu0 %v1494_v0 }
  0xb7   : > { %1101 = vmatpush3.bf16.msra.mxu0 %v1100_v62 }
  0xb8   : > { %1102 = vmatprep.subr.bf16.mxu0 %v1494_v0 }
  0xbb   : > { %1104 = vmatpush3.bf16.msra.mxu0 %v1103_v1 }
  0xbc   : > { %1105 = vmatprep.subr.bf16.mxu0 %v1494_v0 }
  0xbf   : > { %1107 = vmatpush3.bf16.msra.mxu0 %v1106_v5 }
  0xc0   : > { %1108 = vmatprep.subr.bf16.mxu0 %v1494_v0 }
  0xc3   : > { %1110 = vmatpush3.bf16.msra.mxu0 %v1109_v8 }
  0xc4   : > { %1111 = vmatprep.subr.bf16.mxu0 %v1494_v0 }
  0xc7   : > { %1113 = vmatpush3.bf16.msra.mxu0 %v1112_v11 }
  0xca   : > { %1040 = vmatmul.mubr.f32.vlgmr.msra.gmra.mrb[2].mxu0 %v368_v51 }
 0x17d   : > { %v451_v12 = vpop.f32.mrb[0].mxu0 }
 0x17e   : > { %v455_v13 = vmul.f32 0.17677669, %v451_v12  ;;  %v971_v14 = vpop.f32.mrb[1].mxu0 }
 0x180   : > { %456 = vst [vmem:[%s353_s7] sm:$0xff] %v455_v13 }
 0x181   : > { %1349 = shalt.err (!%p1346_p8)
}
 0x182   : > { %s1350_s21 = scalar_lea.hbm %s1810_s19, 128  ;;  %s1354_s11 = scalar_lea.hbm %s1931_s4, 2048 }
 0x183   : > { %p1351_p1 = scmp.ne.s32.totalorder %s1810_s19, %s1350_s21  ;;  %p1355_p12 = scmp.lt.u32.totalorder %s1810_s19, %s1931_s4 }
 0x184   : > { %p1356_p6 = scmp.lt.u32.totalorder %s1354_s11, %s1350_s21  ;;  %p1358_p5 = scmp.lt.u32.totalorder %s1350_s21, %s1810_s19 }
 0x185   : > { %p1352_p11 = pnand %p1351_p1, %p1692_p0 }
 0x186   : > { %p1357_p3 = por %p1356_p6, %p1355_p12 }
 0x187   : > { %p1353_p10 = pneg %p1352_p11 }
 0x188   : > { %p1359_p7 = por %p1358_p5, %p1357_p3 }
 0x18a   : > { %p1360_p9 = pnand %p1359_p7, %p1353_p10 }
 0x18c   : > { %1363 = shalt.err (!%p1360_p9)
}
 0x18d   : > { %1128 = dma.vmem_to_hbm [thread:$0]  (%p1692_p0), %s1812_s8, 128, %s1810_s19, %s632_s14   ;;  %v539_v0 = vpop.f32.mrb[0].mxu1 }
 0x18e   : > { %543 = vst [vmem:[%s360_s13] sm:$0xff] %v539_v0  ;;  %v1006_v15 = vpop.f32.mrb[1].mxu1  ;;  %s1956_s12 = sand.u32 1, %s1566_s27   ;;  %s1364_s21 = scalar_lea.vmem %s1814_s9, 128 }
 0x18f   : > { %s1848_s15 = scalar_lea.sflag [#allocation12], %s1956_s12  ;;  %p1365_p13 = scmp.ne.s32.totalorder %s1814_s9, %s1364_s21 }
 0x190   : > { %s1498_s7 = smov [#allocation11]  }
 0x191   : > { %p1366_p2 = pnand %p1365_p13, %p1692_p0  ;;  %s1368_s24 = sshll.u32 %s1498_s7, 4  ;;  %s1369_s24 = int_to_ptr.vmem [resolvable:$false] %s1368_s24 }
 0x192   : > { %s1370_s11 = scalar_lea.vmem %s1369_s24, 256  ;;  %p1371_p8 = scmp.lt.s32.totalorder %s1814_s9, %s1369_s24 }
 0x193   : > { %p1367_p4 = pneg %p1366_p2  ;;  %p1372_p1 = scmp.lt.s32.totalorder %s1370_s11, %s1364_s21 }
 0x195   : > { %p1373_p11 = por %p1372_p1, %p1371_p8 }
 0x197   : > { %p1374_p10 = pnand %p1373_p11, %p1367_p4 }
 0x199   : > { %1377 = shalt.err (!%p1374_p10)
}
 0x19a   : > { %s1378_s27 = scalar_lea.hbm %s1820_s20, 128  ;;  %s1382_s19 = scalar_lea.hbm %s1932_s5, 2048 }
 0x19b   : > { %p1379_p12 = scmp.ne.s32.totalorder %s1820_s20, %s1378_s27  ;;  %p1383_p5 = scmp.lt.u32.totalorder %s1820_s20, %s1932_s5 }
 0x19c   : > { %p1384_p7 = scmp.lt.u32.totalorder %s1382_s19, %s1378_s27  ;;  %p1386_p13 = scmp.lt.u32.totalorder %s1378_s27, %s1820_s20 }
 0x19d   : > { %p1380_p6 = pnand %p1379_p12, %p1692_p0 }
 0x19e   : > { %p1385_p9 = por %p1384_p7, %p1383_p5 }
 0x19f   : > { %p1381_p3 = pneg %p1380_p6 }
 0x1a0   : > { %p1387_p2 = por %p1386_p13, %p1385_p9 }
 0x1a2   : > { %p1388_p4 = pnand %p1387_p2, %p1381_p3 }
 0x1a4   : > { %1391 = shalt.err (!%p1388_p4)
}
 0x1a5   : > { %1129 = dma.vmem_to_hbm [thread:$0]  (%p1692_p0), %s1814_s9, 128, %s1820_s20, %s1848_s15   ;;  %v626_v16 = vpop.f32.mrb[2].mxu0 }
 0x1a6   : > { %s367_s30 = scalar_lea.vmem [#allocation13], %s1750_s17  ;;  %s1879_s24 = scalar_lea.hbm %s1933_s6, %s1799_s29  ;;  %v1041_v17 = vpop.f32.mrb[3].mxu0 }
 0x1a7   : > { %s684_s12 = sshll.u32 %s367_s30, 4  ;;  %630 = vst [vmem:[%s367_s30] sm:$0xff] %v626_v16  ;;  %s1499_s17 = smov [#allocation13]   ;;  %s1873_s12 = int_to_ptr.vmem [resolvable:$true] %s684_s12 }
 0x1a8   : > { %s1392_s11 = scalar_lea.vmem %s1873_s12, 128  ;;  %s1396_s9 = sshll.u32 %s1499_s17, 4  ;;  %s1397_s9 = int_to_ptr.vmem [resolvable:$false] %s1396_s9 }
 0x1a9   : > { %p1393_p8 = scmp.ne.s32.totalorder %s1873_s12, %s1392_s11  ;;  %s1398_s20 = scalar_lea.vmem %s1397_s9, 256 }
 0x1aa   : > { %p1399_p10 = scmp.lt.s32.totalorder %s1873_s12, %s1397_s9  ;;  %p1400_p12 = scmp.lt.s32.totalorder %s1398_s20, %s1392_s11 }
 0x1ab   : > { %p1394_p1 = pnand %p1393_p8, %p1692_p0 }
 0x1ac   : > { %p1401_p6 = por %p1400_p12, %p1399_p10 }
 0x1ad   : > { %p1395_p11 = pneg %p1394_p1 }
 0x1af   : > { %p1402_p3 = pnand %p1401_p6, %p1395_p11 }
 0x1b1   : > { %1405 = shalt.err (!%p1402_p3)
}
 0x1b2   : > { %s1406_s29 = scalar_lea.hbm %s1879_s24, 128  ;;  %s1410_s13 = scalar_lea.hbm %s1933_s6, 2048 }
 0x1b3   : > { %p1407_p5 = scmp.ne.s32.totalorder %s1879_s24, %s1406_s29  ;;  %p1411_p13 = scmp.lt.u32.totalorder %s1879_s24, %s1933_s6 }
 0x1b4   : > { %p1412_p2 = scmp.lt.u32.totalorder %s1410_s13, %s1406_s29  ;;  %p1414_p8 = scmp.lt.u32.totalorder %s1406_s29, %s1879_s24 }
 0x1b5   : > { %p1408_p7 = pnand %p1407_p5, %p1692_p0 }
 0x1b6   : > { %p1413_p4 = por %p1412_p2, %p1411_p13 }
 0x1b7   : > { %p1409_p9 = pneg %p1408_p7 }
 0x1b8   : > { %p1415_p1 = por %p1414_p8, %p1413_p4 }
 0x1ba   : > { %p1416_p11 = pnand %p1415_p1, %p1409_p9 }
 0x1bc   : > { %1419 = shalt.err (!%p1416_p11)
}
 0x1bd   : > { %1130 = dma.vmem_to_hbm [thread:$0]  (%p1692_p0), %s1873_s12, 128, %s1879_s24, %s1848_s15  }
 0x1be PF: > { %s1957_s18 = sld [smem:[#allocation19_spill]]  ;;  %s1958_s30 = sld [smem:[#allocation20_spill]] }
 0x1bf   : > { %p1165_p10 = scmp.ge.s32.totalorder %s1486_s26, 2 }
 0x1c4   : > { %s696_s21 = sand.u32 1, %s1957_s18   ;;  %p1959_p12 = scmp.ne.s32.totalorder %s1958_s30, 0 }
 0x1c5   : > { %s697_s7 = scalar_lea.sflag [#allocation4], %s696_s21 }
 0x1c6   : > { %p1149_p6 = pnand %p1165_p10, %p1959_p12 }
 0x1c8   : > { %1457 = dma.done.wait (!%p1149_p6), %s697_s7, 128  }
 0x1c9   : > { %1459 = vsyncadd (!%p1149_p6), %s697_s7, 4294967168  ;;  %s1960_s11 = sadd.s32 4294967294, %s1486_s26  }
 0x1ca   : > { %s705_s17 = sand.u32 1, %s1960_s11  }
 0x1cb   : > { %s706_s9 = scalar_lea.sflag [#allocation12], %s705_s17 }
 0x1cc   : > { %1461 = dma.done.wait (!%p1149_p6), %s706_s9, 256  }
 0x1cd   : > { %1463 = vsyncadd (!%p1149_p6), %s706_s9, 4294967040  ;;  %s28_s26 = sadd.s32 1, %s1486_s26   ;;  %s1961_s21 = smov %s1470_s22 }
 0x1ce   : > { %p25_p0 = scmp.ge.s32.totalorder %s28_s26, 18   ;;  %s1962_s22 = smov %s1474_s23 }
 0x1cf   : > { %s1963_s23 = smov %s1704_s16  ;;  %s1964_s24 = smov %s1482_s25 }
 0x1d0   : > { %s1965_s25 = smov %s1967_s10  ;;  %27 = sbr.rel (!%p25_p0) target bundleno = 10 (0xa), region = 128 }
 0x1d7   :  { %720 = vsyncpa [#allocation3], 1 }
 0x1d8   :  { %722 = vsyncpa [#allocation3 + $0x1], 1 }
 0x1d9   :  { %723 = vsyncpa [#allocation6], 1 }
 0x1da   :  { %724 = vsyncpa [#allocation9], 1 }
 0x1db   :  { %725 = vsyncpa [#allocation4], 1 }
 0x1dc   :  { %727 = vsyncpa [#allocation4 + $0x1], 1 }
 0x1dd   :  { %728 = vsyncpa [#allocation12], 1 }
 0x1de   :  { %730 = vsyncpa [#allocation12 + $0x1], 1 }

</bundles_post_ra>
